<compile_context>
chip_gen: v6e
topology: v6e:2x2x1
jax: 0.10.0
libtpu: 0.0.40
codegen_flags: <defaults>
</compile_context>

<pallas_src>
import functools

import numpy as np

import jax
import jax.numpy as jnp
from jax.experimental import pallas as pl
from jax.experimental.pallas import tpu as pltpu

_LANES = 1024              # lane-dense last dim (multiple of 128)
_SUBLANES = 8              # vreg sublane width; minimum row bucket
_TILE_ROWS = 256           # (256, 1024) f32 = 1 MiB per pipelined block
_GRIDLESS_MAX_ROWS = 256   # whole-array single VMEM block up to ~1 MiB (f32)


def _identity_kernel(x_ref, o_ref):
    # Elementwise read of the value tile (the only array-shaped work in the
    # module's forward). Whole tile is resident in VMEM.
    o_ref[...] = x_ref[...]


@functools.lru_cache(maxsize=None)
def _passthrough_gridless(rows, lanes, dtype):
    """Single whole-array VMEM block, no grid, output aliased to input."""
    return pl.pallas_call(
        _identity_kernel,
        out_shape=jax.ShapeDtypeStruct((rows, lanes), dtype),
        in_specs=[pl.BlockSpec(memory_space=pltpu.MemorySpace.VMEM)],
        out_specs=pl.BlockSpec(memory_space=pltpu.MemorySpace.VMEM),
        input_output_aliases={0: 0},
    )


@functools.lru_cache(maxsize=None)
def _passthrough_tiled(rows, lanes, dtype, tile_rows=_TILE_ROWS):
    """Lane-dense pipelined copy; rows is a multiple of tile_rows, grid >= 2."""
    return pl.pallas_call(
        _identity_kernel,
        out_shape=jax.ShapeDtypeStruct((rows, lanes), dtype),
        grid=(rows // tile_rows,),
        in_specs=[pl.BlockSpec((tile_rows, lanes), lambda i: (i, 0))],
        out_specs=pl.BlockSpec((tile_rows, lanes), lambda i: (i, 0)),
        input_output_aliases={0: 0},
        compiler_params=pltpu.CompilerParams(
            dimension_semantics=("parallel",)),
    )


def _next_pow2(x):
    return 1 << (x - 1).bit_length() if x > 1 else 1


def _bucket_rows(n):
    """Bucket padded rows to a small fixed set to bound recompiles."""
    rows_needed = max(1, -(-n // _LANES))
    rows = max(_SUBLANES, _next_pow2(rows_needed))
    tiled = rows > _GRIDLESS_MAX_ROWS
    if tiled:
        # power-of-two rows > 256 are >= 512 -> multiple of _TILE_ROWS and a
        # grid of >= 2 steps (both v7x TensorCores participate).
        rows = max(rows, 2 * _TILE_ROWS)
    return rows, tiled


def float_to_string_mapper(x):
    """JAX/Pallas equivalent of FloatToStringMapper.forward.

    x: 1-D array of floats (jax or numpy). Returns the space-joined string of
    per-element Python float reprs, matching `' '.join(str(v.item()) ...)`.
    """
    x_dev = jnp.asarray(x)          # no-op if x is already a device array
    assert x_dev.ndim == 1
    n = x_dev.shape[0]
    if n == 0:
        return ""

    rows, tiled = _bucket_rows(n)
    # Device-side zero pad + lane-dense reshape (no numpy / device_put).
    padded = jnp.pad(x_dev, (0, rows * _LANES - n)).reshape(rows, _LANES)

    fn = (_passthrough_tiled(rows, _LANES, padded.dtype) if tiled
          else _passthrough_gridless(rows, _LANES, padded.dtype))
    out = fn(padded)

    # Single D2H of only the n live elements; device_get blocks.
    vals = np.asarray(jax.device_get(out.reshape(-1)[:n]))

    # TODO(synk): string formatting / ' '.join has no Pallas equivalent; host-side.
    # float(v) widens exactly like torch .item(), so str() matches
    # PyTorch's str(value.item()).
    return " ".join(str(float(v)) for v in vals)


if __name__ == "__main__":
    key = jax.random.PRNGKey(0)
    # Small 1-D input, consistent with iterating `for value in x` in the module.
    n = 8
    x = jax.random.normal(key, (n,), dtype=jnp.float32)   # device-resident
    x_host = np.asarray(x)                                 # host copy for checks

    # --- Gridless path smoke test (values only): one (8, 1024) vreg-tiled block.
    small = jnp.pad(x, (0, _SUBLANES * _LANES - n)).reshape(_SUBLANES, _LANES)
    out_small = jax.block_until_ready(
        _passthrough_gridless(_SUBLANES, _LANES, small.dtype)(small))
    assert np.array_equal(np.asarray(out_small).reshape(-1)[:n], x_host)

    # --- Tiled path smoke test: grid of 2 one-MiB blocks (values only). ---
    rows = 2 * _TILE_ROWS
    big_host = np.arange(rows * _LANES, dtype=np.float32).reshape(rows, _LANES)
    big = jnp.asarray(big_host)
    out_big = jax.block_until_ready(
        _passthrough_tiled(rows, _LANES, big.dtype)(big))
    assert np.array_equal(np.asarray(out_big), big_host)

    # --- Full forward: elementwise pass on TPU, string join on host. ---
    result = float_to_string_mapper(x)
    assert isinstance(result, str)
    assert len(result.split(" ")) == n
    expected = " ".join(str(float(v)) for v in x_host)
    assert result == expected

    print("KERNEL_OK")
</pallas_src>

<mosaic_0001>
module attributes {stable_mosaic.version = 11 : i64} {
  func.func @_identity_kernel(%arg0: memref<8x1024xf32, #tpu.memory_space<vmem>>, %arg1: memref<8x1024xf32, #tpu.memory_space<vmem>>) attributes {dimension_semantics = [], scalar_prefetch = 0 : i64, scratch_operands = 0 : i64, tpu.core_type = #tpu.core_type<tc>} {
    %c0 = arith.constant 0 : index
    %c0_0 = arith.constant 0 : index
    %0 = vector.load %arg0[%c0, %c0_0] : memref<8x1024xf32, #tpu.memory_space<vmem>>, vector<8x1024xf32>
    %c0_1 = arith.constant 0 : index
    %c0_2 = arith.constant 0 : index
    %1 = vector.load %arg1[%c0_1, %c0_2] : memref<8x1024xf32, #tpu.memory_space<vmem>>, vector<8x1024xf32>
    tpu.vector_store %arg1[%c0_1, %c0_2], %0 {strides = array<i32>} : memref<8x1024xf32, #tpu.memory_space<vmem>>, vector<8x1024xf32>,
    return
  }
}

</mosaic_0001>

<bundles_post_ra>
// kernel: tpu_custom_call.1
= control target key start
LH: loop header
LB: loop body
LE: loop exit
PB: predicated region body
PF: predicated region fallthrough
CT: control target
= control target key end

     0   :  { %6 = vsyncpa [#allocation3], 0  ;;  %s116_s0 = inlined_call_operand.hbm [shape: f32[8,1024], index: 0, kind: input, shape index: {}, may-alias: {0,1}]   ;;  %s117_s1 = inlined_call_operand.hbm [shape: f32[8,1024], index: 1, kind: output, shape index: {}, may-alias: {0,1}]  }
   0x1   :  { %7 = vsyncpa [#allocation4], 0  ;;  %s98_s6 = smov [#allocation2]  }
   0x2   :  { %s14_s7 = sshll.u32 %s98_s6, 4  ;;  %s15_s7 = int_to_ptr.vmem [resolvable:$true] %s14_s7 }
   0x3   :  { %s62_s8 = scalar_lea.vmem %s15_s7, 1024  ;;  %p67_p1 = scmp.lt.s32.totalorder %s15_s7, %s15_s7 }
   0x4   :  { %p63_p0 = scmp.ne.s32.totalorder %s15_s7, %s62_s8  ;;  %p68_p2 = scmp.lt.s32.totalorder %s62_s8, %s62_s8 }
   0x6   :  { %p69_p3 = por %p68_p2, %p67_p1 }
   0x8   :  { %p70_p4 = pnand %p69_p3, %p63_p0 }
   0xa   :  { %73 = shalt.err (!%p70_p4)
}
   0xb   :  { %17 = dma.hbm_to_vmem [thread:$0]  %s116_s0, 1024, %s15_s7, [#allocation3]  }
   0xc   :  { %94 = dma.done.wait [#allocation3], 1024  }
   0xd   :  { %95 = vsyncadd [#allocation3], 4294966272  ;;  %s99_s11 = smov [#allocation5]   ;;  %v21_v0 = vld [vmem:[#allocation2] sm:$0xff]  ;;  %v22_v1 = vld [vmem:[#allocation2 + $0x8] sm:$0xff] }
   0xe   :  { %s43_s12 = sshll.u32 %s99_s11, 4  ;;  %v23_v2 = vld [vmem:[#allocation2 + $0x10] sm:$0xff]  ;;  %29 = vst [vmem:[#allocation5] sm:$0xff] %v21_v0  ;;  %30 = vst [vmem:[#allocation5 + $0x8] sm:$0xff] %v22_v1  ;;  %v24_v3 = vld [vmem:[#allocation2 + $0x18] sm:$0xff]  ;;  %s44_s12 = int_to_ptr.vmem [resolvable:$true] %s43_s12 }
   0xf   :  { %31 = vst [vmem:[#allocation5 + $0x10] sm:$0xff] %v23_v2  ;;  %v25_v4 = vld [vmem:[#allocation2 + $0x20] sm:$0xff]  ;;  %v26_v5 = vld [vmem:[#allocation2 + $0x28] sm:$0xff]  ;;  %32 = vst [vmem:[#allocation5 + $0x18] sm:$0xff] %v24_v3  ;;  %s74_s0 = scalar_lea.vmem %s44_s12, 1024  ;;  %p79_p6 = scmp.lt.s32.totalorder %s44_s12, %s44_s12 }
  0x10   :  { %33 = vst [vmem:[#allocation5 + $0x20] sm:$0xff] %v25_v4  ;;  %34 = vst [vmem:[#allocation5 + $0x28] sm:$0xff] %v26_v5  ;;  %v27_v6 = vld [vmem:[#allocation2 + $0x30] sm:$0xff]  ;;  %v28_v7 = vld [vmem:[#allocation2 + $0x38] sm:$0xff]  ;;  %p75_p5 = scmp.ne.s32.totalorder %s44_s12, %s74_s0  ;;  %p80_p7 = scmp.lt.s32.totalorder %s74_s0, %s74_s0 }
  0x11   :  { %35 = vst [vmem:[#allocation5 + $0x30] sm:$0xff] %v27_v6  ;;  %36 = vst [vmem:[#allocation5 + $0x38] sm:$0xff] %v28_v7 }
  0x12   :  { %p81_p8 = por %p80_p7, %p79_p6 }
  0x14   :  { %p82_p9 = pnand %p81_p8, %p75_p5 }
  0x16   :  { %85 = shalt.err (!%p82_p9)
}
  0x17   :  { %46 = dma.vmem_to_hbm [thread:$0]  %s44_s12, 1024, %s117_s1, [#allocation4]  }
  0x18   :  { %96 = dma.done.wait [#allocation4], 1024  }
  0x19   :  { %97 = vsyncadd [#allocation4], 4294966272 }
  0x1a   :  { %50 = vsyncpa [#allocation3], 1 }
  0x1b   :  { %51 = vsyncpa [#allocation4], 1 }

</bundles_post_ra>
